<compile_context>
chip_gen: v7x
topology: tpu7x:2x2x1
jax: 0.10.0
libtpu: 0.0.40
codegen_flags: <defaults>
</compile_context>

<pallas_src>
import functools

import jax
import jax.numpy as jnp
from jax import lax
from jax.experimental import pallas as pl
from jax.experimental.pallas import tpu as pltpu


def _cdiv(a: int, b: int) -> int:
    return (a + b - 1) // b


def _round_up(v: int, m: int) -> int:
    return _cdiv(v, m) * m


def _kernel_cached_h(x_ref, wt_ref, b_ref, s_ref, o_ref, h_ref):
    """Grid = (batch tiles i, class tiles j).  The class axis is iterated fully
    and in order ("arbitrary"), so h = x @ W.T + b is computed once per batch
    tile (j == 0), cached in VMEM scratch and reused for every class tile.
    NOTE: this cache is only correct while axis 1 stays "arbitrary"."""

    @pl.when(pl.program_id(1) == 0)
    def _():
        h = jnp.dot(x_ref[...], wt_ref[...], preferred_element_type=jnp.float32)
        h_ref[...] = (h + b_ref[...]).astype(h_ref.dtype)   # cast once, not per class tile

    # out = h @ s.T with s in its native (C, d_out) layout: contract the
    # trailing dim of both operands (no wrapper-side transpose of s).
    o_ref[...] = lax.dot_general(
        h_ref[...],
        s_ref[...],
        dimension_numbers=(((1,), (1,)), ((), ())),
        preferred_element_type=jnp.float32,
    ).astype(o_ref.dtype)


def _kernel_recompute_h(x_ref, wt_ref, b_ref, s_ref, o_ref):
    """Stateless variant: recomputes h in every class tile.  Chosen when the
    whole batch fits in one tile so the class axis can be marked "parallel"
    (keeps both v7x TensorCores busy); only used when d_in is small enough
    that the recompute is cheap relative to the second matmul."""
    h = jnp.dot(x_ref[...], wt_ref[...], preferred_element_type=jnp.float32)
    h = (h + b_ref[...]).astype(s_ref.dtype)
    o_ref[...] = lax.dot_general(
        h,
        s_ref[...],
        dimension_numbers=(((1,), (1,)), ((), ())),
        preferred_element_type=jnp.float32,
    ).astype(o_ref.dtype)


def prepare_params(w, b):
    """One-time static-parameter prep (NOT in the per-call hot path):
    PyTorch layout W:(d_out, d_in), b:(d_out,) -> W.T:(d_in, d_out), b:(1, d_out)."""
    d_out, _ = w.shape
    return jnp.transpose(w), b.reshape(1, d_out)


@jax.jit
def bilinear_forward(x, w_t, b2d, s):
    """(x @ W.T + b) @ s.T with a single gridded Pallas kernel.

    x   : (B, d_in)
    w_t : (d_in, d_out)   pre-transposed Linear weight (from prepare_params)
    b2d : (1, d_out)      pre-reshaped Linear bias     (from prepare_params)
    s   : (C, d_out)      second F.linear weight, native layout (dynamic per call)
    ->  : (B, C)
    """
    B, d_in = x.shape
    _, d_out = w_t.shape
    C, _ = s.shape

    din_pad = _round_up(d_in, 128)
    dout_pad = _round_up(d_out, 128)

    # Batch tiling: minimise padding; keep >=2 batch tiles when B > 8 so the
    # "parallel" batch axis can be split across both v7x TensorCores.
    n_i = max(1, _cdiv(B, 256))
    if B > 8:
        n_i = max(n_i, 2)
    tm = _round_up(_cdiv(B, n_i), 8)
    b_pad = _round_up(B, tm)

    # Class tiling: pad C only to the next multiple of 128, then use the
    # largest lane-dense tile (<=512) that divides it exactly (no extra
    # padding columns are ever streamed for s or written for out).
    c_pad = _round_up(C, 128)
    tn = 128
    for cand in (256, 384, 512):
        if cand <= c_pad and c_pad % cand == 0:
            tn = cand

    grid = (b_pad // tm, c_pad // tn)
    grid_i, grid_j = grid

    # Zero-padding is mathematically inert for both contractions; skip it
    # (and the trailing output slice) entirely when already aligned.
    x_p = x if (b_pad == B and din_pad == d_in) else jnp.pad(
        x, ((0, b_pad - B), (0, din_pad - d_in)))
    w_p = w_t if (din_pad == d_in and dout_pad == d_out) else jnp.pad(
        w_t, ((0, din_pad - d_in), (0, dout_pad - d_out)))
    b_p = b2d if dout_pad == d_out else jnp.pad(b2d, ((0, 0), (0, dout_pad - d_out)))
    s_p = s if (c_pad == C and dout_pad == d_out) else jnp.pad(
        s, ((0, c_pad - C), (0, dout_pad - d_out)))

    # Kernel variant selection (shapes are static at trace time).
    cache_h = not (grid_i == 1 and grid_j >= 2 and d_in <= tn)
    if cache_h:
        kernel = _kernel_cached_h
        scratch_shapes = [pltpu.VMEM((tm, dout_pad), s.dtype)]
        # Class axis MUST stay "arbitrary" (in-order, single core per batch
        # tile) for the h cache to be valid.
        semantics = ("parallel", "arbitrary")
    else:
        kernel = _kernel_recompute_h
        scratch_shapes = []
        semantics = ("parallel", "parallel")

    x_item = jnp.dtype(x.dtype).itemsize
    w_item = jnp.dtype(w_t.dtype).itemsize
    s_item = jnp.dtype(s.dtype).itemsize

    flops = 2 * b_pad * din_pad * dout_pad + 2 * b_pad * dout_pad * c_pad
    bytes_accessed = (
        b_pad * din_pad * x_item
        + din_pad * dout_pad * w_item
        + dout_pad * jnp.dtype(b2d.dtype).itemsize
        + c_pad * dout_pad * s_item
        + b_pad * c_pad * x_item
    )
    cost = pl.CostEstimate(flops=flops, transcendentals=0,
                           bytes_accessed=bytes_accessed)

    # Resident-block VMEM footprint (double-buffered ins/out + h scratch).
    vmem_est = (
        2 * tm * din_pad * x_item
        + 2 * din_pad * dout_pad * w_item
        + 2 * dout_pad * jnp.dtype(b2d.dtype).itemsize
        + 2 * tn * dout_pad * s_item
        + 2 * tm * tn * x_item
        + (tm * dout_pad * s_item if cache_h else 0)
    )
    compiler_kwargs = {"dimension_semantics": semantics}
    if vmem_est > (12 << 20):  # above the smallest (v5e) default scoped limit
        try:
            vmem_cap = pltpu.get_tpu_info().vmem_capacity_bytes
        except Exception:  # conservative fallback (v7x per-core VMEM)
            vmem_cap = 64 << 20
        compiler_kwargs["vmem_limit_bytes"] = int(min(vmem_est + (4 << 20), vmem_cap))
    # TODO(synk): once 2 * d_in * d_out * 4B approaches the VMEM budget
    # (v7x: 64 MiB), single-buffer the grid-invariant W.T/bias blocks
    # (pipeline_mode=pl.Buffered(1)) and/or add a d_in reduction grid axis
    # accumulating into the h scratch; not needed at classifier-scale dims.

    out = pl.pallas_call(
        kernel,
        out_shape=jax.ShapeDtypeStruct((b_pad, c_pad), x.dtype),
        grid_spec=pltpu.PrefetchScalarGridSpec(
            num_scalar_prefetch=0,
            grid=grid,
            in_specs=[
                pl.BlockSpec((tm, din_pad), lambda i, j: (i, 0)),        # x tile
                pl.BlockSpec((din_pad, dout_pad), lambda i, j: (0, 0)),  # W.T (grid-invariant)
                pl.BlockSpec((1, dout_pad), lambda i, j: (0, 0)),        # bias (grid-invariant)
                pl.BlockSpec((tn, dout_pad), lambda i, j: (j, 0)),       # s tile, native layout
            ],
            out_specs=pl.BlockSpec((tm, tn), lambda i, j: (i, j)),
            scratch_shapes=scratch_shapes,
        ),
        compiler_params=pltpu.CompilerParams(**compiler_kwargs),
        cost_estimate=cost,
    )(x_p, w_p, b_p, s_p)

    if b_pad != B or c_pad != C:
        out = out[:B, :C]
    return out


if __name__ == "__main__":
    # Small shapes consistent with the module's forward: x:(B, d_in), s:(C, d_out).
    B, d_in, d_out, C = 8, 32, 32, 16

    key = jax.random.PRNGKey(0)
    kx, ks, kw, kb = jax.random.split(key, 4)

    # Deterministic parameter init (PyTorch nn.Linear-style uniform bounds).
    bound = 1.0 / jnp.sqrt(jnp.float32(d_in))
    w = jax.random.uniform(kw, (d_out, d_in), jnp.float32, -bound, bound)
    b = jax.random.uniform(kb, (d_out,), jnp.float32, -bound, bound)

    # Example inputs.
    x = jax.random.normal(kx, (B, d_in), jnp.float32)
    s = jax.random.normal(ks, (C, d_out), jnp.float32)

    # One-time parameter prep (hoisted out of the forward hot path).
    w_t, b2d = prepare_params(w, b)

    out = jax.block_until_ready(bilinear_forward(x, w_t, b2d, s))

    # Pure-JAX reference for correctness.
    ref = (x @ w.T + b) @ s.T
    assert out.shape == (B, C)
    assert jnp.allclose(out, ref, atol=1e-4, rtol=1e-4)

    print("KERNEL_OK")
</pallas_src>

<mosaic_0001>
module attributes {stable_mosaic.version = 11 : i64} {
  func.func @_kernel_cached_h(%arg0: i32, %arg1: i32, %arg2: memref<8x128xf32, #tpu.memory_space<vmem>>, %arg3: memref<128x128xf32, #tpu.memory_space<vmem>>, %arg4: memref<1x128xf32, #tpu.memory_space<vmem>>, %arg5: memref<128x128xf32, #tpu.memory_space<vmem>>, %arg6: memref<8x128xf32, #tpu.memory_space<vmem>>, %arg7: memref<8x128xf32, #tpu.memory_space<vmem>>) attributes {dimension_semantics = [#tpu.dimension_semantics<parallel>, #tpu.dimension_semantics<arbitrary>], iteration_bounds = array<i64: 1, 1>, scalar_prefetch = 0 : i64, scratch_operands = 1 : i64, tpu.core_type = #tpu.core_type<tc>, window_params = [{transform_indices = @transform_0, window_bounds = array<i64: 8, 128>}, {pipeline_mode = #tpu.pipeline_mode<synchronous>, transform_indices = @transform_1, window_bounds = array<i64: 128, 128>}, {pipeline_mode = #tpu.pipeline_mode<synchronous>, transform_indices = @transform_2, window_bounds = array<i64: 1, 128>}, {transform_indices = @transform_3, window_bounds = array<i64: 128, 128>}, {transform_indices = @transform_4, window_bounds = array<i64: 8, 128>}]} {
    %c0_i32 = arith.constant 0 : i32
    %0 = arith.cmpi eq, %arg1, %c0_i32 : i32
    %1 = arith.extui %0 : i1 to i32
    %c0_i32_0 = arith.constant 0 : i32
    %2 = arith.cmpi ne, %1, %c0_i32_0 : i32
    scf.if %2 {
      %c0_6 = arith.constant 0 : index
      %c0_7 = arith.constant 0 : index
      %7 = vector.load %arg2[%c0_6, %c0_7] : memref<8x128xf32, #tpu.memory_space<vmem>>, vector<8x128xf32>
      %c0_8 = arith.constant 0 : index
      %c0_9 = arith.constant 0 : index
      %8 = vector.load %arg3[%c0_8, %c0_9] : memref<128x128xf32, #tpu.memory_space<vmem>>, vector<128x128xf32>
      %cst_10 = arith.constant dense<0.000000e+00> : vector<8x128xf32>
      %9 = tpu.matmul %7, %8, %cst_10 {dimension_numbers = #tpu.dot_dimension_numbers<[1], [0], [0], [1], [0, 0, 1, 1], [], []>} : vector<8x128xf32>, vector<128x128xf32>, vector<8x128xf32> -> vector<8x128xf32>
      %c0_11 = arith.constant 0 : index
      %c0_12 = arith.constant 0 : index
      %10 = vector.load %arg4[%c0_11, %c0_12] : memref<1x128xf32, #tpu.memory_space<vmem>>, vector<1x128xf32>
      %11 = vector.broadcast %10 : vector<1x128xf32> to vector<8x128xf32>
      %12 = arith.addf %9, %11 : vector<8x128xf32>
      %c0_13 = arith.constant 0 : index
      %c0_14 = arith.constant 0 : index
      %13 = vector.load %arg7[%c0_13, %c0_14] : memref<8x128xf32, #tpu.memory_space<vmem>>, vector<8x128xf32>
      tpu.vector_store %arg7[%c0_13, %c0_14], %12 {strides = array<i32>} : memref<8x128xf32, #tpu.memory_space<vmem>>, vector<8x128xf32>,
    } else {
    }
    %c0 = arith.constant 0 : index
    %c0_1 = arith.constant 0 : index
    %3 = vector.load %arg7[%c0, %c0_1] : memref<8x128xf32, #tpu.memory_space<vmem>>, vector<8x128xf32>
    %c0_2 = arith.constant 0 : index
    %c0_3 = arith.constant 0 : index
    %4 = vector.load %arg5[%c0_2, %c0_3] : memref<128x128xf32, #tpu.memory_space<vmem>>, vector<128x128xf32>
    %cst = arith.constant dense<0.000000e+00> : vector<8x128xf32>
    %5 = tpu.matmul %3, %4, %cst {dimension_numbers = #tpu.dot_dimension_numbers<[1], [1], [0], [0], [0, 0, 1, 0], [], []>} : vector<8x128xf32>, vector<128x128xf32>, vector<8x128xf32> -> vector<8x128xf32>
    %c0_4 = arith.constant 0 : index
    %c0_5 = arith.constant 0 : index
    %6 = vector.load %arg6[%c0_4, %c0_5] : memref<8x128xf32, #tpu.memory_space<vmem>>, vector<8x128xf32>
    tpu.vector_store %arg6[%c0_4, %c0_5], %5 {strides = array<i32>} : memref<8x128xf32, #tpu.memory_space<vmem>>, vector<8x128xf32>,
    return
  }
  func.func @transform_0(%arg0: i32, %arg1: i32) -> (i32, i32) {
    %c0_i32 = arith.constant 0 : i32
    %c0_i32_0 = arith.constant 0 : i32
    return %arg0, %c0_i32 : i32, i32
  }
  func.func @transform_1(%arg0: i32, %arg1: i32) -> (i32, i32) {
    %c0_i32 = arith.constant 0 : i32
    %c0_i32_0 = arith.constant 0 : i32
    %c0_i32_1 = arith.constant 0 : i32
    return %c0_i32, %c0_i32_0 : i32, i32
  }
  func.func @transform_2(%arg0: i32, %arg1: i32) -> (i32, i32) {
    %c0_i32 = arith.constant 0 : i32
    %c0_i32_0 = arith.constant 0 : i32
    %c0_i32_1 = arith.constant 0 : i32
    return %c0_i32, %c0_i32_0 : i32, i32
  }
  func.func @transform_3(%arg0: i32, %arg1: i32) -> (i32, i32) {
    %c0_i32 = arith.constant 0 : i32
    %c0_i32_0 = arith.constant 0 : i32
    return %arg1, %c0_i32 : i32, i32
  }
  func.func @transform_4(%arg0: i32, %arg1: i32) -> (i32, i32) {
    %c0_i32 = arith.constant 0 : i32
    return %arg0, %arg1 : i32, i32
  }
}

</mosaic_0001>

<bundles_post_ra>
// kernel: bilinear_forward.1
= control target key start
LH: loop header
LB: loop body
LE: loop exit
PB: predicated region body
PF: predicated region fallthrough
CT: control target
= control target key end

     0   :  { %v400_v3 = vmov 0.0|0.0   ;;  %vm401_vm0 = vmmov 0   ;;  %v402_v6 = vmov 0.0   ;;  %s559_s0 = inlined_call_operand.vmem [shape: f32[8,128], index: 0, kind: input, shape index: {}]   ;;  %s560_s1 = inlined_call_operand.vmem [shape: f32[128,128], index: 1, kind: input, shape index: {}]   ;;  %s561_s2 = inlined_call_operand.vmem [shape: f32[1,128], index: 2, kind: input, shape index: {}]   ;;  %s562_s3 = inlined_call_operand.vmem [shape: f32[128,128], index: 3, kind: input, shape index: {}]   ;;  %s563_s4 = inlined_call_operand.hbm [shape: f32[8,128], index: 4, kind: output, shape index: {}]  }
   0x1   :  { %v23_v0 = vld [vmem:[%s560_s1] sm:$0xff]  ;;  %v24_v1 = vld [vmem:[%s560_s1 + $0x8] sm:$0xff]  ;;  %v25_v2 = vld [vmem:[%s560_s1 + $0x10] sm:$0xff]  ;;  %324 = vmatprep.subr.bf16.mxu0 %v400_v3  ;;  %286 = vmatprep.mubr.msk.f32.mxu0 %vm401_vm0, %v402_v6 }
   0x2   :  { %v325_v4 = vpack.c.bf16 %v24_v1, %v23_v0  ;;  %v26_v5 = vld [vmem:[%s560_s1 + $0x18] sm:$0xff]  ;;  %348 = vmatprep.subr.bf16.mxu1 %v400_v3  ;;  %321 = vmatprep.mubr.msk.f32.mxu1 %vm401_vm0, %v402_v6  ;;  %v27_v8 = vld [vmem:[%s560_s1 + $0x20] sm:$0xff]  ;;  %v28_v9 = vld [vmem:[%s560_s1 + $0x28] sm:$0xff] }
   0x3   :  { %v328_v7 = vpack.c.bf16 %v26_v5, %v25_v2  ;;  %v118_v10 = vld [vmem:[%s562_s3] sm:$0xff]  ;;  %v119_v11 = vld [vmem:[%s562_s3 + $0x8] sm:$0xff]  ;;  %v331_v12 = vpack.c.bf16 %v28_v9, %v27_v8  ;;  %v29_v14 = vld [vmem:[%s560_s1 + $0x30] sm:$0xff] }
   0x4   :  { %326 = vmatpush3.bf16.msra.mxu0 %v325_v4  ;;  %v349_v13 = vpack.c.bf16 %v119_v11, %v118_v10  ;;  %v30_v15 = vld [vmem:[%s560_s1 + $0x38] sm:$0xff]  ;;  %v120_v16 = vld [vmem:[%s562_s3 + $0x10] sm:$0xff] }
   0x5   :  { %327 = vmatprep.subr.bf16.mxu0 %v400_v3  ;;  %v121_v17 = vld [vmem:[%s562_s3 + $0x18] sm:$0xff]  ;;  %v334_v18 = vpack.c.bf16 %v30_v15, %v29_v14 }
   0x6   :  { %350 = vmatpush3.bf16.xpose.msra.mxu1 %v349_v13 }
   0x7   :  { %351 = vmatprep.subr.bf16.mxu1 %v400_v3 }
   0x8   :  { %329 = vmatpush3.bf16.msra.mxu0 %v328_v7 }
   0x9   :  { %330 = vmatprep.subr.bf16.mxu0 %v400_v3 }
   0xc   :  { %332 = vmatpush3.bf16.msra.mxu0 %v331_v12 }
   0xd   :  { %9 = vsyncpa [#allocation4], 0  ;;  %333 = vmatprep.subr.bf16.mxu0 %v400_v3  ;;  %v31_v19 = vld [vmem:[%s560_s1 + $0x40] sm:$0xff]  ;;  %v32_v20 = vld [vmem:[%s560_s1 + $0x48] sm:$0xff]  ;;  %v352_v21 = vpack.c.bf16 %v121_v17, %v120_v16  ;;  %s403_s29 = smov [#allocation3]  }
   0xe   :  { %v337_v22 = vpack.c.bf16 %v32_v20, %v31_v19  ;;  %v33_v23 = vld [vmem:[%s560_s1 + $0x50] sm:$0xff]  ;;  %v34_v24 = vld [vmem:[%s560_s1 + $0x58] sm:$0xff]  ;;  %v122_v25 = vld [vmem:[%s562_s3 + $0x20] sm:$0xff]  ;;  %s211_s30 = sshll.u32 %s403_s29, 4  ;;  %s212_s30 = int_to_ptr.vmem [resolvable:$true] %s211_s30 }
   0xf   :  { %353 = vmatpush3.bf16.xpose.msra.mxu1 %v352_v21  ;;  %v123_v26 = vld [vmem:[%s562_s3 + $0x28] sm:$0xff]  ;;  %v340_v27 = vpack.c.bf16 %v34_v24, %v33_v23  ;;  %v35_v28 = vld [vmem:[%s560_s1 + $0x60] sm:$0xff]  ;;  %v37_v32 = vld [vmem:[%s560_s1 + $0x70] sm:$0xff]  ;;  %s376_s5 = scalar_lea.vmem %s212_s30, 128  ;;  %p381_p1 = scmp.lt.s32.totalorder %s212_s30, %s212_s30 }
  0x10   :  { %335 = vmatpush3.bf16.msra.mxu0 %v334_v18  ;;  %354 = vmatprep.subr.bf16.mxu1 %v400_v3  ;;  %v36_v29 = vld [vmem:[%s560_s1 + $0x68] sm:$0xff]  ;;  %v355_v30 = vpack.c.bf16 %v123_v26, %v122_v25  ;;  %v38_v33 = vld [vmem:[%s560_s1 + $0x78] sm:$0xff]  ;;  %v124_v34 = vld [vmem:[%s562_s3 + $0x30] sm:$0xff]  ;;  %p377_p0 = scmp.ne.s32.totalorder %s212_s30, %s376_s5  ;;  %p382_p2 = scmp.lt.s32.totalorder %s376_s5, %s376_s5 }
  0x11   :  { %336 = vmatprep.subr.bf16.mxu0 %v400_v3  ;;  %v343_v31 = vpack.c.bf16 %v36_v29, %v35_v28  ;;  %v125_v35 = vld [vmem:[%s562_s3 + $0x38] sm:$0xff]  ;;  %v346_v36 = vpack.c.bf16 %v38_v33, %v37_v32  ;;  %v22_v38 = vld [vmem:[%s559_s0] sm:$0xff]  ;;  %v127_v40 = vld [vmem:[%s562_s3 + $0x48] sm:$0xff] }
  0x12   :  { %v358_v37 = vpack.c.bf16 %v125_v35, %v124_v34  ;;  %v126_v39 = vld [vmem:[%s562_s3 + $0x40] sm:$0xff]  ;;  %v128_v42 = vld [vmem:[%s562_s3 + $0x50] sm:$0xff]  ;;  %v129_v43 = vld [vmem:[%s562_s3 + $0x58] sm:$0xff]  ;;  %p383_p3 = por %p382_p2, %p381_p1 }
  0x13   :  { %v361_v41 = vpack.c.bf16 %v127_v40, %v126_v39  ;;  %v364_v44 = vpack.c.bf16 %v129_v43, %v128_v42  ;;  %v130_v45 = vld [vmem:[%s562_s3 + $0x60] sm:$0xff]  ;;  %v131_v46 = vld [vmem:[%s562_s3 + $0x68] sm:$0xff]  ;;  %v132_v48 = vld [vmem:[%s562_s3 + $0x70] sm:$0xff] }
  0x14   :  { %338 = vmatpush3.bf16.msra.mxu0 %v337_v22  ;;  %v367_v47 = vpack.c.bf16 %v131_v46, %v130_v45  ;;  %v133_v49 = vld [vmem:[%s562_s3 + $0x78] sm:$0xff]  ;;  %v219_v51 = vld [vmem:[%s561_s2] ss:$0 sm:$0xff]  ;;  %p384_p4 = pnand %p383_p3, %p377_p0 }
  0x15   :  { %339 = vmatprep.subr.bf16.mxu0 %v400_v3  ;;  %v370_v50 = vpack.c.bf16 %v133_v49, %v132_v48 }
  0x17   :  { %356 = vmatpush3.bf16.xpose.msra.mxu1 %v355_v30 }
  0x18   :  { %341 = vmatpush3.bf16.msra.mxu0 %v340_v27  ;;  %357 = vmatprep.subr.bf16.mxu1 %v400_v3 }
  0x19   :  { %342 = vmatprep.subr.bf16.mxu0 %v400_v3 }
  0x1c   :  { %344 = vmatpush3.bf16.msra.mxu0 %v343_v31 }
  0x1d   :  { %345 = vmatprep.subr.bf16.mxu0 %v400_v3 }
  0x1f   :  { %359 = vmatpush3.bf16.xpose.msra.mxu1 %v358_v37 }
  0x20   :  { %347 = vmatpush3.bf16.msra.mxu0 %v346_v36  ;;  %360 = vmatprep.subr.bf16.mxu1 %v400_v3 }
  0x23   :  { %287 = vmatmul.mubr.f32.vlgmr.msra.gmra.mrb[0].mxu0 %v22_v38 }
  0x27   :  { %362 = vmatpush3.bf16.xpose.msra.mxu1 %v361_v41 }
  0x28   :  { %363 = vmatprep.subr.bf16.mxu1 %v400_v3 }
  0x2f   :  { %365 = vmatpush3.bf16.xpose.msra.mxu1 %v364_v44 }
  0x30   :  { %366 = vmatprep.subr.bf16.mxu1 %v400_v3 }
  0x37   :  { %368 = vmatpush3.bf16.xpose.msra.mxu1 %v367_v47 }
  0x38   :  { %369 = vmatprep.subr.bf16.mxu1 %v400_v3 }
  0x3f   :  { %371 = vmatpush3.bf16.xpose.msra.mxu1 %v370_v50 }
  0xf6   :  { %v112_v52 = vpop.f32.mrb[0].mxu0 }
  0xf7   :  { %v113_v53 = vadd.f32 %v219_v51, %v112_v52  ;;  %v288_v54 = vpop.f32.mrb[1].mxu0 }
  0xf9   :  { %322 = vmatmul.mubr.f32.vlgmr.msra.gmra.mrb[0].mxu1 %v113_v53 }
 0x1cc   :  { %v200_v55 = vpop.f32.mrb[0].mxu1 }
 0x1cd   :  { %204 = vst [vmem:[#allocation3] sm:$0xff] %v200_v55  ;;  %v323_v56 = vpop.f32.mrb[1].mxu1 }
 0x1ce   :  { %387 = shalt.err (!%p384_p4)
}
 0x1cf   :  { %s388_s2 = scalar_lea.hbm %s563_s4, 128 }
 0x1d0   :  { %p389_p5 = scmp.ne.s32.totalorder %s563_s4, %s388_s2  ;;  %p392_p6 = scmp.lt.u32.totalorder %s388_s2, %s563_s4 }
 0x1d2   :  { %p394_p7 = pnand %p392_p6, %p389_p5 }
 0x1d4   :  { %397 = shalt.err (!%p394_p7)
}
 0x1d5   :  { %214 = dma.vmem_to_hbm [thread:$0]  %s212_s30, 128, %s563_s4, [#allocation4]  }
 0x1d6   :  { %398 = dma.done.wait [#allocation4], 128  }
 0x1d7   :  { %399 = vsyncadd [#allocation4], 4294967168 }
 0x1d8   :  { %218 = vsyncpa [#allocation4], 1 }

</bundles_post_ra>
